<compile_context>
chip_gen: v5e
topology: v5e:2x2
jax: 0.10.0
libtpu: 0.0.40
codegen_flags: <defaults>
</compile_context>

<pallas_src>
import jax
import jax.numpy as jnp
from jax.experimental import pallas as pl
from jax.experimental.pallas import tpu as pltpu

EPS = 1e-5
NEG_SLOPE = 0.01  # nn.LeakyReLU() default


def _cdiv(a, b):
    return (a + b - 1) // b


def _round_up(a, b):
    return _cdiv(a, b) * b


def _vmem_limit_bytes():
    # Generation-aware scoped-VMEM limit: ~3/4 of physical VMEM per TensorCore
    # (v7x: 64 MiB -> 48 MiB, v5e/v6e: 128 MiB -> 96 MiB), leaving headroom for
    # compiler scratch / double buffering.
    try:
        cap = pltpu.get_tpu_info().vmem_capacity_bytes
    except Exception:
        cap = 64 * 1024 * 1024  # conservative (v7x physical)
    return max(32 * 1024 * 1024, int(cap * 3 // 4))


def _make_conv_stats_kernel(n_k, tk, weight_resident):
    # w_ref : (Cout, K) bf16 (resident)  or (Cout, tk) bf16 (fallback)
    # p_ref : (1, tk, tl) bf16   transposed im2col patches (spatial on lanes)
    # out_ref: (1, Cout, tl) bf16 conv output tile (lane-dense spatial)
    # sum_ref/sq_ref: (1, 1, Cout, 1) f32  per-tile per-channel partial stats
    # acc_ref: (Cout, tl) f32 scratch accumulator (persists across K steps)
    def kernel(w_ref, p_ref, out_ref, sum_ref, sq_ref, acc_ref):
        k = pl.program_id(2)

        @pl.when(k == 0)
        def _():
            acc_ref[...] = jnp.zeros_like(acc_ref)

        if weight_resident and n_k > 1:
            start = pl.multiple_of(k * tk, tk)
            w = w_ref[:, pl.ds(start, tk)]
        else:
            w = w_ref[...]

        acc_ref[...] += jnp.dot(w, p_ref[0], preferred_element_type=jnp.float32)

        @pl.when(k == n_k - 1)
        def _():
            acc = acc_ref[...]
            out_ref[0] = acc.astype(out_ref.dtype)
            # per-channel partial sums over this tile's lanes (padded lanes are
            # exactly zero -> contribute nothing to sum / sumsq)
            sum_ref[0, 0] = jnp.sum(acc, axis=1, keepdims=True)
            sq_ref[0, 0] = jnp.sum(acc * acc, axis=1, keepdims=True)

    return kernel


def _bn_lrelu_kernel(x_ref, scale_ref, shift_ref, o_ref):
    # x_ref: (1, Cout, tl2) bf16 ; scale/shift: (Cout, 1) f32 broadcast on lanes.
    y = x_ref[0].astype(jnp.float32) * scale_ref[...] + shift_ref[...]
    o_ref[0] = jnp.where(y > 0.0, y, NEG_SLOPE * y)


def conv_4x4_forward(x_nchw, weight_oihw, gamma, beta):
    N, Cin, H, W = x_nchw.shape
    Cout = weight_oihw.shape[0]
    KH = KW = 4
    stride = 2
    Ho = (H + 2 - KH) // stride + 1
    Wo = (W + 2 - KW) // stride + 1
    M = Ho * Wo              # spatial (lane) axis per image
    K = KH * KW * Cin        # contraction axis

    limit = _vmem_limit_bytes()
    budget = int(limit * 0.8)

    # ---- weight residency + tile selection (VMEM-footprint driven) ----
    w_bytes_full = 2 * Cout * K * 2          # bf16, conservatively x2 buffers
    weight_resident = w_bytes_full <= budget // 2

    def k1_footprint(tl_, tk_):
        w = w_bytes_full if weight_resident else 2 * Cout * tk_ * 2
        p = 2 * tk_ * tl_ * 2                # patches bf16, double buffered
        o = 2 * Cout * tl_ * 2               # conv out bf16, double buffered
        acc = Cout * tl_ * 4                 # f32 accumulator scratch
        st = 4 * Cout * 4                    # stats (tiny)
        return w + p + o + acc + st

    Mp128 = _round_up(M, 128)
    tl = 128
    for cand in (2048, 1024, 512, 256, 128):
        if cand <= Mp128 and k1_footprint(cand, min(K, 256)) <= budget:
            tl = cand
            break
    # v7x has 2 TensorCores: expose >= 2 parallel grid tiles when possible.
    while N * _cdiv(M, tl) < 2 and tl > 128:
        tl //= 2

    tk = K
    if k1_footprint(tl, tk) > budget:
        for cand in (4096, 2048, 1024, 512, 256):
            if cand < K and K % cand == 0 and k1_footprint(tl, cand) <= budget:
                tk = cand
                break
    while k1_footprint(tl, tk) > budget and tl > 128:
        tl //= 2

    Mp = _round_up(M, tl)                    # zero-padded spatial length
    n_m = Mp // tl
    n_k = _cdiv(K, tk)

    # ---- glue (layout only, bf16): pad + transposed im2col ----
    # patches_t[n, (kh*KW+kw)*Cin + ci, ho*Wo + wo] = x_pad[n, ci, 2ho+kh, 2wo+kw]
    xp = jnp.pad(x_nchw.astype(jnp.bfloat16), ((0, 0), (0, 0), (1, 1), (1, 1)))
    taps = []
    for kh in range(KH):
        for kw in range(KW):
            taps.append(xp[:, :, kh:kh + stride * Ho:stride,
                           kw:kw + stride * Wo:stride])
    patches_t = jnp.stack(taps, axis=1).reshape(N, K, M)          # (N, K, M)
    if Mp != M:
        patches_t = jnp.pad(patches_t, ((0, 0), (0, 0), (0, Mp - M)))

    # weight (Cout, Cin, KH, KW) -> (Cout, KH, KW, Cin) -> (Cout, K), bf16
    wt = jnp.transpose(weight_oihw, (0, 2, 3, 1)).reshape(Cout, K)
    wt = wt.astype(jnp.bfloat16)

    if weight_resident:
        # constant block index -> fetched once by the pipeliner, never re-DMA'd
        w_spec = pl.BlockSpec((Cout, K), lambda n, m, k: (0, 0))
    else:
        w_spec = pl.BlockSpec((Cout, tk), lambda n, m, k: (0, k))

    k1_flops = 2 * N * Mp * K * Cout
    k1_bytes = (Cout * K * 2 + N * K * Mp * 2 + N * Cout * Mp * 2
                + 2 * N * n_m * Cout * 4)

    # ---- kernel 1: conv as tiled MXU matmul + fused BN partial statistics ----
    conv_out, sums, sqs = pl.pallas_call(
        _make_conv_stats_kernel(n_k, tk, weight_resident),
        grid=(N, n_m, n_k),
        in_specs=[
            w_spec,
            pl.BlockSpec((1, tk, tl), lambda n, m, k: (n, k, m)),
        ],
        out_specs=[
            pl.BlockSpec((1, Cout, tl), lambda n, m, k: (n, 0, m)),
            pl.BlockSpec((1, 1, Cout, 1), lambda n, m, k: (n, m, 0, 0)),
            pl.BlockSpec((1, 1, Cout, 1), lambda n, m, k: (n, m, 0, 0)),
        ],
        out_shape=[
            jax.ShapeDtypeStruct((N, Cout, Mp), jnp.bfloat16),
            jax.ShapeDtypeStruct((N, n_m, Cout, 1), jnp.float32),
            jax.ShapeDtypeStruct((N, n_m, Cout, 1), jnp.float32),
        ],
        scratch_shapes=[pltpu.VMEM((Cout, tl), jnp.float32)],
        compiler_params=pltpu.CompilerParams(
            dimension_semantics=("parallel", "parallel", "arbitrary"),
            vmem_limit_bytes=limit,
            allow_input_fusion=[False, True],   # let XLA fuse im2col into DMA
        ),
        cost_estimate=pl.CostEstimate(
            flops=k1_flops, transcendentals=0, bytes_accessed=k1_bytes),
    )(wt, patches_t)

    # ---- tiny Cout-sized glue: finish batch stats, precompute scale/shift ----
    cnt = jnp.float32(N * M)                 # true element count (pads are 0)
    s = jnp.sum(sums, axis=(0, 1, 3))        # (Cout,)
    ss = jnp.sum(sqs, axis=(0, 1, 3))        # (Cout,)
    mean = s / cnt
    var = jnp.maximum(ss / cnt - mean * mean, 0.0)   # biased (training) var
    # TODO(synk): E[x^2]-mean^2 can cancel if |mean| >> std per channel; switch
    # to a Welford-style tile combine if that regime matters.
    scale = gamma.astype(jnp.float32) * jax.lax.rsqrt(var + EPS)
    shift = beta.astype(jnp.float32) - mean * scale
    scale2 = scale.reshape(Cout, 1)
    shift2 = shift.reshape(Cout, 1)

    # ---- kernel 2: tiled normalize (one FMA) + LeakyReLU epilogue ----
    def k2_footprint(tl2_):
        return 2 * Cout * tl2_ * 2 + 2 * Cout * tl2_ * 4 + 4 * Cout * 4

    cands = [c for c in (Mp, 8192, 4096, 2048, 1024, 512, 256, 128)
             if c <= Mp and Mp % c == 0 and k2_footprint(c) <= budget]
    if not cands:
        cands = [tl]
    tl2 = cands[0]
    if N == 1:                                # keep >=2 parallel tiles for v7x
        for c in cands:
            if Mp // c >= 2:
                tl2 = c
                break
    n_m2 = Mp // tl2

    k2_bytes = N * Cout * Mp * (2 + 4) + 2 * Cout * 4
    y = pl.pallas_call(
        _bn_lrelu_kernel,
        grid=(N, n_m2),
        in_specs=[
            pl.BlockSpec((1, Cout, tl2), lambda n, m: (n, 0, m)),
            pl.BlockSpec((Cout, 1), lambda n, m: (0, 0)),
            pl.BlockSpec((Cout, 1), lambda n, m: (0, 0)),
        ],
        out_specs=pl.BlockSpec((1, Cout, tl2), lambda n, m: (n, 0, m)),
        out_shape=jax.ShapeDtypeStruct((N, Cout, Mp), jnp.float32),
        compiler_params=pltpu.CompilerParams(
            dimension_semantics=("parallel", "parallel"),
            vmem_limit_bytes=limit),
        cost_estimate=pl.CostEstimate(
            flops=4 * N * Cout * Mp, transcendentals=0,
            bytes_accessed=k2_bytes),
    )(conv_out, scale2, shift2)

    if Mp != M:
        y = y[:, :, :M]
    # (N, Cout, Ho*Wo) -> NCHW is a free reshape (no transpose needed).
    return y.reshape(N, Cout, Ho, Wo)


if __name__ == "__main__":
    key = jax.random.PRNGKey(0)
    k1, k2 = jax.random.split(key)

    N, Cin, H, W, Cout = 2, 4, 16, 16, 8
    x = jax.random.normal(k1, (N, Cin, H, W), jnp.float32)
    # deterministic synthetic parameters (shapes per nn.Conv2d / nn.BatchNorm2d)
    weight = jax.random.normal(k2, (Cout, Cin, 4, 4), jnp.float32) * 0.1
    gamma = jnp.ones((Cout,), jnp.float32)
    beta = jnp.zeros((Cout,), jnp.float32)

    out = jax.jit(conv_4x4_forward)(x, weight, gamma, beta)
    out = jax.block_until_ready(out)

    # pure-JAX reference with bf16 operands (matches MXU operand precision),
    # f32 accumulation; kernel additionally stores the conv intermediate in
    # bf16 -> small tolerance.
    ref_conv = jax.lax.conv_general_dilated(
        x.astype(jnp.bfloat16), weight.astype(jnp.bfloat16),
        window_strides=(2, 2), padding=((1, 1), (1, 1)),
        dimension_numbers=("NCHW", "OIHW", "NCHW"),
        preferred_element_type=jnp.float32)
    m = jnp.mean(ref_conv, axis=(0, 2, 3), keepdims=True)
    v = jnp.mean((ref_conv - m) ** 2, axis=(0, 2, 3), keepdims=True)
    ref = (ref_conv - m) * jax.lax.rsqrt(v + EPS)
    ref = jnp.where(ref > 0, ref, NEG_SLOPE * ref)

    assert out.shape == (N, Cout, H // 2, W // 2), out.shape
    err = float(jnp.max(jnp.abs(out - ref)))
    assert err < 3e-2, err
    print("KERNEL_OK")
</pallas_src>

<mosaic_0001>
module attributes {stable_mosaic.version = 11 : i64} {
  func.func @kernel(%arg0: i32, %arg1: i32, %arg2: i32, %arg3: memref<8x64xbf16, #tpu.memory_space<vmem>>, %arg4: memref<1x64x128xbf16, #tpu.memory_space<vmem>>, %arg5: memref<1x8x128xbf16, #tpu.memory_space<vmem>>, %arg6: memref<1x1x8x1xf32, #tpu.memory_space<vmem>>, %arg7: memref<1x1x8x1xf32, #tpu.memory_space<vmem>>, %arg8: memref<8x128xf32, #tpu.memory_space<vmem>>) attributes {dimension_semantics = [#tpu.dimension_semantics<parallel>, #tpu.dimension_semantics<parallel>, #tpu.dimension_semantics<arbitrary>], iteration_bounds = array<i64: 2, 1, 1>, scalar_prefetch = 0 : i64, scratch_operands = 1 : i64, tpu.core_type = #tpu.core_type<tc>, window_params = [{pipeline_mode = #tpu.pipeline_mode<synchronous>, transform_indices = @transform_0, window_bounds = array<i64: 8, 64>}, {transform_indices = @transform_1, window_bounds = array<i64: 1, 64, 128>}, {transform_indices = @transform_2, window_bounds = array<i64: 1, 8, 128>}, {transform_indices = @transform_3, window_bounds = array<i64: 1, 1, 8, 1>}, {transform_indices = @transform_4, window_bounds = array<i64: 1, 1, 8, 1>}]} {
    %c0_i32 = arith.constant 0 : i32
    %0 = arith.cmpi eq, %arg2, %c0_i32 : i32
    %1 = arith.extui %0 : i1 to i32
    %c0_i32_0 = arith.constant 0 : i32
    %2 = arith.cmpi ne, %1, %c0_i32_0 : i32
    scf.if %2 {
      %cst_11 = arith.constant 0.000000e+00 : f32
      %13 = vector.broadcast %cst_11 : f32 to vector<8x128xf32>
      %c0_12 = arith.constant 0 : index
      %c0_13 = arith.constant 0 : index
      %14 = vector.load %arg8[%c0_12, %c0_13] : memref<8x128xf32, #tpu.memory_space<vmem>>, vector<8x128xf32>
      tpu.vector_store %arg8[%c0_12, %c0_13], %13 {strides = array<i32>} : memref<8x128xf32, #tpu.memory_space<vmem>>, vector<8x128xf32>,
    } else {
    }
    %c0 = arith.constant 0 : index
    %c0_1 = arith.constant 0 : index
    %3 = vector.load %arg3[%c0, %c0_1] : memref<8x64xbf16, #tpu.memory_space<vmem>>, vector<8x64xbf16>
    %c0_2 = arith.constant 0 : index
    %c0_3 = arith.constant 0 : index
    %4 = vector.load %arg8[%c0_2, %c0_3] : memref<8x128xf32, #tpu.memory_space<vmem>>, vector<8x128xf32>
    %c0_4 = arith.constant 0 : index
    %c0_5 = arith.constant 0 : index
    %c0_6 = arith.constant 0 : index
    %5 = vector.load %arg4[%c0_4, %c0_5, %c0_6] : memref<1x64x128xbf16, #tpu.memory_space<vmem>>, vector<1x64x128xbf16>
    %6 = vector.shape_cast %5 : vector<1x64x128xbf16> to vector<64x128xbf16>
    %cst = arith.constant dense<0.000000e+00> : vector<8x128xf32>
    %7 = tpu.matmul %3, %6, %cst {dimension_numbers = #tpu.dot_dimension_numbers<[1], [0], [0], [1], [0, 0, 1, 1], [], []>} : vector<8x64xbf16>, vector<64x128xbf16>, vector<8x128xf32> -> vector<8x128xf32>
    %8 = arith.addf %4, %7 : vector<8x128xf32>
    %c0_7 = arith.constant 0 : index
    %c0_8 = arith.constant 0 : index
    %9 = vector.load %arg8[%c0_7, %c0_8] : memref<8x128xf32, #tpu.memory_space<vmem>>, vector<8x128xf32>
    tpu.vector_store %arg8[%c0_7, %c0_8], %8 {strides = array<i32>} : memref<8x128xf32, #tpu.memory_space<vmem>>, vector<8x128xf32>,
    %c0_i32_9 = arith.constant 0 : i32
    %10 = arith.cmpi eq, %arg2, %c0_i32_9 : i32
    %11 = arith.extui %10 : i1 to i32
    %c0_i32_10 = arith.constant 0 : i32
    %12 = arith.cmpi ne, %11, %c0_i32_10 : i32
    scf.if %12 {
      %c0_11 = arith.constant 0 : index
      %c0_12 = arith.constant 0 : index
      %13 = vector.load %arg8[%c0_11, %c0_12] : memref<8x128xf32, #tpu.memory_space<vmem>>, vector<8x128xf32>
      %14 = arith.truncf %13 : vector<8x128xf32> to vector<8x128xbf16>
      %c0_13 = arith.constant 0 : index
      %c0_14 = arith.constant 0 : index
      %c0_15 = arith.constant 0 : index
      %15 = vector.load %arg5[%c0_13, %c0_14, %c0_15] : memref<1x8x128xbf16, #tpu.memory_space<vmem>>, vector<1x8x128xbf16>
      %16 = vector.shape_cast %15 : vector<1x8x128xbf16> to vector<8x128xbf16>
      %17 = vector.shape_cast %14 : vector<8x128xbf16> to vector<1x8x128xbf16>
      tpu.vector_store %arg5[%c0_13, %c0_14, %c0_15], %17 {strides = array<i32>} : memref<1x8x128xbf16, #tpu.memory_space<vmem>>, vector<1x8x128xbf16>,
      %cst_16 = arith.constant dense<0.000000e+00> : vector<8xf32>
      %18 = vector.multi_reduction <add>, %13, %cst_16 [1] : vector<8x128xf32> to vector<8xf32>
      %19 = vector.shape_cast %18 : vector<8xf32> to vector<8x1xf32>
      %c0_17 = arith.constant 0 : index
      %c0_18 = arith.constant 0 : index
      %c0_19 = arith.constant 0 : index
      %c0_20 = arith.constant 0 : index
      %20 = vector.load %arg6[%c0_17, %c0_18, %c0_19, %c0_20] : memref<1x1x8x1xf32, #tpu.memory_space<vmem>>, vector<1x1x8x1xf32>
      %21 = vector.shape_cast %20 : vector<1x1x8x1xf32> to vector<8x1xf32>
      %22 = vector.shape_cast %19 : vector<8x1xf32> to vector<1x1x8x1xf32>
      tpu.vector_store %arg6[%c0_17, %c0_18, %c0_19, %c0_20], %22 {strides = array<i32>} : memref<1x1x8x1xf32, #tpu.memory_space<vmem>>, vector<1x1x8x1xf32>,
      %23 = arith.mulf %13, %13 : vector<8x128xf32>
      %cst_21 = arith.constant dense<0.000000e+00> : vector<8xf32>
      %24 = vector.multi_reduction <add>, %23, %cst_21 [1] : vector<8x128xf32> to vector<8xf32>
      %25 = vector.shape_cast %24 : vector<8xf32> to vector<8x1xf32>
      %c0_22 = arith.constant 0 : index
      %c0_23 = arith.constant 0 : index
      %c0_24 = arith.constant 0 : index
      %c0_25 = arith.constant 0 : index
      %26 = vector.load %arg7[%c0_22, %c0_23, %c0_24, %c0_25] : memref<1x1x8x1xf32, #tpu.memory_space<vmem>>, vector<1x1x8x1xf32>
      %27 = vector.shape_cast %26 : vector<1x1x8x1xf32> to vector<8x1xf32>
      %28 = vector.shape_cast %25 : vector<8x1xf32> to vector<1x1x8x1xf32>
      tpu.vector_store %arg7[%c0_22, %c0_23, %c0_24, %c0_25], %28 {strides = array<i32>} : memref<1x1x8x1xf32, #tpu.memory_space<vmem>>, vector<1x1x8x1xf32>,
    } else {
    }
    return
  }
  func.func @transform_0(%arg0: i32, %arg1: i32, %arg2: i32) -> (i32, i32) {
    %c0_i32 = arith.constant 0 : i32
    %c0_i32_0 = arith.constant 0 : i32
    %c0_i32_1 = arith.constant 0 : i32
    return %c0_i32, %c0_i32_0 : i32, i32
  }
  func.func @transform_1(%arg0: i32, %arg1: i32, %arg2: i32) -> (i32, i32, i32) {
    %c0_i32 = arith.constant 0 : i32
    return %arg0, %arg2, %arg1 : i32, i32, i32
  }
  func.func @transform_2(%arg0: i32, %arg1: i32, %arg2: i32) -> (i32, i32, i32) {
    %c0_i32 = arith.constant 0 : i32
    %c0_i32_0 = arith.constant 0 : i32
    return %arg0, %c0_i32, %arg1 : i32, i32, i32
  }
  func.func @transform_3(%arg0: i32, %arg1: i32, %arg2: i32) -> (i32, i32, i32, i32) {
    %c0_i32 = arith.constant 0 : i32
    %c0_i32_0 = arith.constant 0 : i32
    %c0_i32_1 = arith.constant 0 : i32
    return %arg0, %arg1, %c0_i32, %c0_i32_0 : i32, i32, i32, i32
  }
  func.func @transform_4(%arg0: i32, %arg1: i32, %arg2: i32) -> (i32, i32, i32, i32) {
    %c0_i32 = arith.constant 0 : i32
    %c0_i32_0 = arith.constant 0 : i32
    %c0_i32_1 = arith.constant 0 : i32
    return %arg0, %arg1, %c0_i32, %c0_i32_0 : i32, i32, i32, i32
  }
}

module attributes {stable_mosaic.version = 11 : i64} {
  func.func @_bn_lrelu_kernel(%arg0: i32, %arg1: i32, %arg2: memref<1x8x128xbf16, #tpu.memory_space<vmem>>, %arg3: memref<8x1xf32, #tpu.memory_space<vmem>>, %arg4: memref<8x1xf32, #tpu.memory_space<vmem>>, %arg5: memref<1x8x128xf32, #tpu.memory_space<vmem>>) attributes {dimension_semantics = [#tpu.dimension_semantics<parallel>, #tpu.dimension_semantics<parallel>], iteration_bounds = array<i64: 2, 1>, scalar_prefetch = 0 : i64, scratch_operands = 0 : i64, tpu.core_type = #tpu.core_type<tc>, window_params = [{transform_indices = @transform_0, window_bounds = array<i64: 1, 8, 128>}, {pipeline_mode = #tpu.pipeline_mode<synchronous>, transform_indices = @transform_1, window_bounds = array<i64: 8, 1>}, {pipeline_mode = #tpu.pipeline_mode<synchronous>, transform_indices = @transform_2, window_bounds = array<i64: 8, 1>}, {transform_indices = @transform_3, window_bounds = array<i64: 1, 8, 128>}]} {
    %c0 = arith.constant 0 : index
    %c0_0 = arith.constant 0 : index
    %c0_1 = arith.constant 0 : index
    %0 = vector.load %arg2[%c0, %c0_0, %c0_1] : memref<1x8x128xbf16, #tpu.memory_space<vmem>>, vector<1x8x128xbf16>
    %1 = vector.shape_cast %0 : vector<1x8x128xbf16> to vector<8x128xbf16>
    %2 = arith.extf %1 : vector<8x128xbf16> to vector<8x128xf32>
    %c0_2 = arith.constant 0 : index
    %c0_3 = arith.constant 0 : index
    %3 = vector.load %arg3[%c0_2, %c0_3] : memref<8x1xf32, #tpu.memory_space<vmem>>, vector<8x1xf32>
    %4 = vector.broadcast %3 : vector<8x1xf32> to vector<8x128xf32>
    %5 = arith.mulf %2, %4 : vector<8x128xf32>
    %c0_4 = arith.constant 0 : index
    %c0_5 = arith.constant 0 : index
    %6 = vector.load %arg4[%c0_4, %c0_5] : memref<8x1xf32, #tpu.memory_space<vmem>>, vector<8x1xf32>
    %7 = vector.broadcast %6 : vector<8x1xf32> to vector<8x128xf32>
    %8 = arith.addf %5, %7 : vector<8x128xf32>
    %cst = arith.constant 0.000000e+00 : f32
    %9 = vector.broadcast %cst : f32 to vector<8x128xf32>
    %10 = arith.cmpf ogt, %8, %9 : vector<8x128xf32>
    %cst_6 = arith.constant 0.00999999977 : f32
    %11 = vector.broadcast %cst_6 : f32 to vector<8x128xf32>
    %12 = arith.mulf %11, %8 : vector<8x128xf32>
    %13 = arith.select %10, %8, %12 : vector<8x128xi1>, vector<8x128xf32>
    %c0_7 = arith.constant 0 : index
    %c0_8 = arith.constant 0 : index
    %c0_9 = arith.constant 0 : index
    %14 = vector.load %arg5[%c0_7, %c0_8, %c0_9] : memref<1x8x128xf32, #tpu.memory_space<vmem>>, vector<1x8x128xf32>
    %15 = vector.shape_cast %14 : vector<1x8x128xf32> to vector<8x128xf32>
    %16 = vector.shape_cast %13 : vector<8x128xf32> to vector<1x8x128xf32>
    tpu.vector_store %arg5[%c0_7, %c0_8, %c0_9], %16 {strides = array<i32>} : memref<1x8x128xf32, #tpu.memory_space<vmem>>, vector<1x8x128xf32>,
    return
  }
  func.func @transform_0(%arg0: i32, %arg1: i32) -> (i32, i32, i32) {
    %c0_i32 = arith.constant 0 : i32
    %c0_i32_0 = arith.constant 0 : i32
    return %arg0, %c0_i32, %arg1 : i32, i32, i32
  }
  func.func @transform_1(%arg0: i32, %arg1: i32) -> (i32, i32) {
    %c0_i32 = arith.constant 0 : i32
    %c0_i32_0 = arith.constant 0 : i32
    %c0_i32_1 = arith.constant 0 : i32
    return %c0_i32, %c0_i32_0 : i32, i32
  }
  func.func @transform_2(%arg0: i32, %arg1: i32) -> (i32, i32) {
    %c0_i32 = arith.constant 0 : i32
    %c0_i32_0 = arith.constant 0 : i32
    %c0_i32_1 = arith.constant 0 : i32
    return %c0_i32, %c0_i32_0 : i32, i32
  }
  func.func @transform_3(%arg0: i32, %arg1: i32) -> (i32, i32, i32) {
    %c0_i32 = arith.constant 0 : i32
    %c0_i32_0 = arith.constant 0 : i32
    return %arg0, %c0_i32, %arg1 : i32, i32, i32
  }
}

</mosaic_0001>

<bundles_post_ra>
// kernel: conv_4x4_forward.3
= control target key start
LH: loop header
LB: loop body
LE: loop exit
PB: predicated region body
PF: predicated region fallthrough
CT: control target
= control target key end

     0   :  { %s371_s12 = smov 0   ;;  %s373_s13 = smov 0   ;;  %s407_s0 = inlined_call_operand.vmem [shape: bf16[2,8,128], index: 0, kind: input, shape index: {}]   ;;  %s408_s1 = inlined_call_operand.vmem [shape: f32[8,1], index: 1, kind: input, shape index: {}]   ;;  %s409_s2 = inlined_call_operand.vmem [shape: f32[8,1], index: 2, kind: input, shape index: {}]   ;;  %s410_s3 = inlined_call_operand.vmem [shape: f32[2,8,128], index: 3, kind: output, shape index: {}]  }
   0x1   :  { %s375_s14 = smov 0  }
   0x2 LB: > { %s25_s15 = sadd.s32 1, %s344_s13  ;;  %p295_p0 = scmp.ge.s32.totalorder %s348_s14, 1  ;;  %s348_s14 = sphi %s375_s14, %s13_s14   ;;  %s344_s13 = sphi %s373_s13, %s412_s13   ;;  %s340_s12 = sphi %s371_s12, %s411_s12  }
   0x3   : > { %p27_p1 = scmp.ge.s32.totalorder %s25_s15, 2  ;;  %p155_p2 = scmp.lt.s32.totalorder %s348_s14, 3 }
   0x5   : > { %s414_s15 = smov (%p27_p1, %s25_s15), 0  ;;  %p156_p3 = pnand %p295_p0, %p155_p2 }
   0x6   : > { %p183_p4 = scmp.lt.s32.totalorder (!%p156_p3), %s340_s12, 1 }
   0x7   : > { %159 = sbr.rel (%p156_p3) target bundleno = 143 (0x8f), region = 32 }
   0xc   : > { %v199_v0 = vld [vmem:[%s408_s1] sm:$0xff]  ;;  %v350_v1 = vmov 0   ;;  %s416_s12 = smov (!%p183_p4, %s340_s12), 1 }
   0xd   : > { %325 = vset.pattern.permute.xlu0 %v350_v1  ;;  %v206_v2 = vld [vmem:[%s409_s2] sm:$0xff]  ;;  %s296_s20 = sshll.u32 %s416_s12, 2  ;;  %s297_s24 = sshll.u32 %s416_s12, 3 }
   0xe   : > { %202 = vperm.xlu0 %325, %v199_v0   ;;  %s189_s23 = scalar_lea.vmem %s407_s0, %s296_s20  ;;  %s196_s27 = scalar_lea.vmem %s410_s3, %s297_s24 }
   0xf   : > { %v197_v4 = vld [vmem:[%s189_s23] sm:$0xf] }
  0x10   : > { %v198_v5 = vunpack.c.l.bf16 %v197_v4 }
  0x16   : > { %209 = vperm.xlu0 %325, %v206_v2  }
  0x80   : > { %v203_v3 = vpop.permute.xlu0 %202 }
  0x81   : > { %v205_v6 = vmul.f32 %v203_v3, %v198_v5 }
  0x88   : > { %v210_v7 = vpop.permute.xlu0 %209 }
  0x89   : > { %v212_v8 = vadd.f32 %v210_v7, %v205_v6 }
  0x8b   : > { %vm213_vm0 = vcmp.gt.f32.partialorder %v212_v8, 0.0  ;;  %v214_v9 = vmul.f32 0.01, %v212_v8 }
  0x8d   : > { %v215_v10 = vsel %vm213_vm0, %v212_v8, %v214_v9 }
  0x8e   : > { %216 = vst [vmem:[%s196_s27] sm:$0xff] %v215_v10 }
  0x8f PF: > { %s13_s14 = sadd.s32 1, %s348_s14   ;;  %s411_s12 = smov %s344_s13 }
  0x90   : > { %p10_p5 = scmp.ge.s32.totalorder %s13_s14, 4   ;;  %s412_s13 = smov %s414_s15 }
  0x92   :  { %12 = sbr.rel (!%p10_p5) target bundleno = 2 (0x2), region = 62 }

// kernel: conv_4x4_forward.4
= control target key start
LH: loop header
LB: loop body
LE: loop exit
PB: predicated region body
PF: predicated region fallthrough
CT: control target
= control target key end

     0   :  { %s919_s20 = smov 0   ;;  %s921_s21 = smov 0   ;;  %s982_s0 = inlined_call_operand.vmem [shape: bf16[8,64], index: 0, kind: input, shape index: {}]   ;;  %s983_s1 = inlined_call_operand.vmem [shape: bf16[2,64,64], index: 1, kind: input, shape index: {}]   ;;  %s984_s2 = inlined_call_operand.<no memory space> [shape: bf16[], index: 2, kind: input, shape index: {}]   ;;  %s985_s3 = inlined_call_operand.vmem [shape: bf16[2,8,128], index: 3, kind: output, shape index: {0}]   ;;  %s986_s4 = inlined_call_operand.vmem [shape: f32[2,1,8,1], index: 4, kind: output, shape index: {1}]   ;;  %s987_s5 = inlined_call_operand.vmem [shape: f32[2,1,8,1], index: 5, kind: output, shape index: {2}]  }
   0x1   :  { %v11_v0 = vstv %s984_s2  ;;  %s923_s22 = smov 0  }
   0x2   :  { %v917_v1 = vunpack.i.l.bf16 %v11_v0 }
   0x3 LB: > { %s40_s2 = sadd.s32 1, %s878_s21  ;;  %p799_p0 = scmp.ge.s32.totalorder %s882_s22, 1  ;;  %s882_s22 = sphi %s923_s22, %s21_s22   ;;  %s878_s21 = sphi %s921_s21, %s989_s21   ;;  %s874_s20 = sphi %s919_s20, %s988_s20  }
   0x4   : > { %p42_p1 = scmp.ge.s32.totalorder %s40_s2, 2  ;;  %p214_p2 = scmp.lt.s32.totalorder %s882_s22, 3 }
   0x6   : > { %s991_s2 = smov (%p42_p1, %s40_s2), 0  ;;  %p215_p3 = pnand %p799_p0, %p214_p2 }
   0x8   : > { %218 = sbr.rel (%p215_p3) target bundleno = 299 (0x12b), region = 28 }
   0xd   : > { %p268_p4 = scmp.lt.s32.totalorder %s874_s20, 1  ;;  %v323_v2 = vlaneseq  ;;  %v563_v36 = vld [vmem:[%s982_s0] sm:$0xf]  ;;  %vm597_vm1 = vcmask 523264   ;;  %vm624_vm2 = vcmask 7168  }
   0xf   : > { %s993_s20 = smov (!%p268_p4, %s874_s20), 1  ;;  %v324_v3 = vand.u32 127, %v323_v2 }
  0x10   : > { %s831_s23 = sshll.u32 %s993_s20, 5  ;;  %s802_s29 = sshll.u32 %s993_s20, 2 }
  0x11   : > { %s278_s26 = scalar_lea.vmem %s983_s1, %s831_s23  ;;  %vm327_vm0 = vcmp.lt.s32.totalorder %v324_v3, 64  ;;  %s288_s7 = scalar_lea.vmem %s985_s3, %s802_s29 }
  0x12   : > { %v810_v4 = vld [vmem:[%s278_s26 + $0x18] sm:$0xff]   ;;  %v808_v5 = vld [vmem:[%s278_s26 + $0x10] sm:$0xff]   ;;  %v806_v6 = vld [vmem:[%s278_s26 + $0x8] sm:$0xff]   ;;  %s803_s8 = sshll.u32 %s993_s20, 3 }
  0x13   : > { %v507_v7 = vunpack.c.l.bf16 %v810_v4  ;;  %v539_v8 = vunpack.c.h.bf16 %v810_v4  ;;  %v443_v9 = vunpack.c.l.bf16 %v808_v5  ;;  %v475_v10 = vunpack.c.h.bf16 %v808_v5  ;;  %v315_v11 = vld [vmem:[%s278_s26] sm:$0xff]   ;;  %s295_s11 = scalar_lea.vmem %s986_s4, %s803_s8  ;;  %s302_s14 = scalar_lea.vmem %s987_s5, %s803_s8 }
  0x14   : > { %v379_v12 = vunpack.c.l.bf16 %v806_v6  ;;  %v411_v13 = vunpack.c.h.bf16 %v806_v6  ;;  %v316_v14 = vunpack.c.l.bf16 %v315_v11  ;;  %v347_v15 = vunpack.c.h.bf16 %v315_v11 }
  0x15   : > { %v519_v16 = vsel %vm327_vm0, %v507_v7, %v917_v1  ;;  %v551_v17 = vsel %vm327_vm0, %v539_v8, %v917_v1  ;;  %v455_v18 = vsel %vm327_vm0, %v443_v9, %v917_v1  ;;  %v487_v19 = vsel %vm327_vm0, %v475_v10, %v917_v1 }
  0x16   : > { %v521_v20 = vpack.c.bf16 0.0, %v519_v16  ;;  %v553_v21 = vpack.c.bf16 0.0, %v551_v17  ;;  %v457_v22 = vpack.c.bf16 0.0, %v455_v18  ;;  %v489_v23 = vpack.c.bf16 0.0, %v487_v19 }
  0x17   : > { %v391_v24 = vsel %vm327_vm0, %v379_v12, %v917_v1  ;;  %v423_v25 = vsel %vm327_vm0, %v411_v13, %v917_v1  ;;  %v328_v26 = vsel %vm327_vm0, %v316_v14, %v917_v1  ;;  %v359_v28 = vsel %vm327_vm0, %v347_v15, %v917_v1 }
  0x18   : > { %524 = vst [vmem:[#allocation8 + $0x18] sm:$0xf] %v521_v20  ;;  %v393_v27 = vpack.c.bf16 0.0, %v391_v24  ;;  %v425_v29 = vpack.c.bf16 0.0, %v423_v25  ;;  %v329_v30 = vpack.c.bf16 0.0, %v328_v26  ;;  %v361_v31 = vpack.c.bf16 0.0, %v359_v28 }
  0x19   : > { %556 = vst [vmem:[#allocation8 + $0x1c] sm:$0xf] %v553_v21 }
  0x1a   : > { %460 = vst [vmem:[#allocation8 + $0x10] sm:$0xf] %v457_v22 }
  0x1b   : > { %492 = vst [vmem:[#allocation8 + $0x14] sm:$0xf] %v489_v23 }
  0x1c   : > { %396 = vst [vmem:[#allocation8 + $0x8] sm:$0xf] %v393_v27 }
  0x1d   : > { %428 = vst [vmem:[#allocation8 + $0xc] sm:$0xf] %v425_v29 }
  0x1e   : > { %332 = vst [vmem:[#allocation8] sm:$0xf] %v329_v30 }
  0x1f   : > { %364 = vst [vmem:[#allocation8 + $0x4] sm:$0xf] %v361_v31 }
  0x20   : > { %v835_v32 = vld [vmem:[#allocation8 + $0x18] sm:$0xff] }
  0x21   : > { %605 = vmatpush.bf16.msra.mxu0 %v835_v32 }
  0x22   : > { %v834_v33 = vld [vmem:[#allocation8 + $0x10] sm:$0xff] }
  0x24   : > { %v833_v34 = vld [vmem:[#allocation8 + $0x8] sm:$0xff] }
  0x25   : > { %606 = vmatpush.bf16.msra.mxu0 %v834_v33 }
  0x26   : > { %v832_v35 = vld [vmem:[#allocation8] sm:$0xff] }
  0x29   : > { %607 = vmatpush.bf16.msra.mxu0 %v833_v34 }
  0x2d   : > { %608 = vmatpush.bf16.msra.mxu0 %v832_v35 }
  0x30   : > { %828 = vmatmul.msk.bf16.vlgmr.msra.gmra.mxu0 %vm597_vm1, %v563_v36 }
  0xad   : > { %v610_v37 = vpop.f32.mrf.mxu0 }
  0xae   : > { %v620_v38 = vpack.c.bf16 %v610_v37, %v610_v37  ;;  %622 = vadd.xlane.f32.xlu0 %v610_v37  ;;  %v626_v39 = vmul.f32 %v610_v37, %v610_v37 }
  0xb0   : > { %621 = vst [vmem:[%s288_s7] sm:$0xf] %v620_v38 }
  0xb5   : > { %v612_v40 = vpop.f32.mrf.mxu0 }
  0xb6   : > { %627 = vadd.xlane.f32.xlu0 %v626_v39 }
 0x121   : > { %v623_v41 = vpop.xlane.xlu0 %622 }
 0x122   : > { %625 = vst.msk [vmem:[%s295_s11] sm:$0xff] %vm624_vm2, %v623_v41 }
 0x129   : > { %v628_v42 = vpop.xlane.xlu0 %627 }
 0x12a   : > { %629 = vst.msk [vmem:[%s302_s14] sm:$0xff] %vm624_vm2, %v628_v42 }
 0x12b PF: > { %s21_s22 = sadd.s32 1, %s882_s22   ;;  %s988_s20 = smov %s878_s21 }
 0x12c   : > { %p18_p5 = scmp.ge.s32.totalorder %s21_s22, 4   ;;  %s989_s21 = smov %s991_s2 }
 0x12e   :  { %20 = sbr.rel (!%p18_p5) target bundleno = 3 (0x3), region = 104 }

</bundles_post_ra>
